<compile_context>
chip_gen: v6e
topology: v6e:2x2x1
jax: 0.10.0
libtpu: 0.0.40
codegen_flags: <defaults>
</compile_context>

<pallas_src>
import functools

import jax
import jax.numpy as jnp
from jax.experimental import pallas as pl
from jax.experimental.pallas import tpu as pltpu


def _round_up(v, m):
    return ((v + m - 1) // m) * m


def _pick_tb(batch, tb_max=8):
    """Batch-block size for stage 1. Prefer a sublane-friendly multiple of 8
    that divides the batch; tiny batches are taken as one full block. For v7x,
    production batches should yield >= 2 (even) batch blocks so both
    TensorCores get balanced work."""
    if batch <= tb_max:
        return batch
    for tb in range(tb_max - tb_max % 8, 0, -8):
        if batch % tb == 0:
            return tb
    return batch


def _pick_thw(hw, c, tb, itemsize, budget_bytes=8 * 1024 * 1024):
    """Largest lane-dense spatial tile whose double-buffered x block stays
    within a conservative VMEM budget (sized against v7x's 64 MiB physical /
    v5e's 16 MiB scoped default rather than v6e's 128 MiB). Spatial extents
    that aren't a multiple of 128 (e.g. 14x14=196) fall back to a single
    full-extent tile, which BlockSpec allows."""
    if hw % 128 != 0:
        return hw
    cap = max(128, budget_bytes // (2 * tb * c * itemsize))
    thw = min(hw, (cap // 128) * 128)
    while hw % thw != 0:
        thw -= 128
    return thw


def _backbone_pool_kernel(x_ref, wct_ref, emb_ref, acc_ref, *, inv_hw):
    """Synthetic backbone: 1x1 conv (channel contraction) + ReLU + global
    average pool, streaming spatial tiles into a tiny pooled accumulator.

    x_ref:   (TB, C, THW)  batch block of images; spatial tile on the lane axis
    wct_ref: (C, Ep)       1x1-conv weight, transposed & zero-padded (Ep % 128 == 0)
    emb_ref: (TB, Ep)      pooled embeddings (lane-dense output store)
    acc_ref: (TB, Ep)      VMEM scratch: running pooled sum across spatial tiles
    """
    k = pl.program_id(1)

    @pl.when(k == 0)
    def _init():
        acc_ref[...] = jnp.zeros_like(acc_ref)

    wct = wct_ref[...]
    tb = x_ref.shape[0]
    rows = []
    # K = C is tiny (4), so this contraction is nowhere near MXU peak — but
    # stage 1 is HBM-bandwidth bound, so the MXU has plenty of slack and the
    # per-tile spatial reduce rides the otherwise-idle XLU slot. Everything is
    # lane-dense on Ep. TB is small (<= 8 here), so a static unroll is fine;
    # much larger TB would switch to lax.fori_loop.
    for b in range(tb):                                  # static unroll
        xb = x_ref[b]                                    # (C, THW)
        hb = jax.lax.dot_general(                        # (THW, Ep)
            xb, wct, dimension_numbers=(((0,), (0,)), ((), ())),
            preferred_element_type=jnp.float32)
        hb = jnp.maximum(hb, 0.0)                        # ReLU before pooling
        rows.append(jnp.sum(hb, axis=0, keepdims=True))  # (1, Ep) partial pool
    acc_ref[...] += jnp.concatenate(rows, axis=0)        # (TB, Ep)

    @pl.when(k == pl.num_programs(1) - 1)
    def _finalize():
        emb_ref[...] = acc_ref[...] * inv_hw             # mean over H*W


def _projector_kernel(emb_ref, w1_ref, gamma_ref, beta_ref, w2_ref, out_ref, *, eps):
    """Projector: Linear(E->D1, no bias) -> BatchNorm1d (training-mode batch
    stats, biased variance) -> ReLU -> Linear(D1->D2, no bias).

    Sees the whole batch in one block so BN statistics match PyTorch, and so
    Linear-1 runs as a single M=B MXU matmul instead of per-sample GEMVs.
    For production-sized B/D1/D2 this stage would tile D1 on a "parallel" axis
    for BN+ReLU and accumulate the D1 contraction of Linear-2 over an
    "arbitrary" axis (P3 pattern); at these shapes one block is optimal.
    """
    z = jnp.dot(emb_ref[...], w1_ref[...],
                preferred_element_type=jnp.float32)               # (B, D1)
    mean = jnp.mean(z, axis=0, keepdims=True)
    var = jnp.mean((z - mean) ** 2, axis=0, keepdims=True)        # biased (training)
    zhat = (z - mean) * jax.lax.rsqrt(var + eps)
    a = jnp.maximum(zhat * gamma_ref[...] + beta_ref[...], 0.0)
    out_ref[...] = jnp.dot(a, w2_ref[...],
                           preferred_element_type=jnp.float32)    # (B, D2p)


def mmcr_encoder_forward(x_nchw, conv_w, w1, gamma, beta, w2, *,
                         input_dtype=None, tb_max=8):
    """MMCREncoder forward.

    x_nchw: (B, C, H, W) f32
    conv_w: (E, C)   synthetic backbone 1x1-conv weight (PyTorch out,in)
    w1:     (D1, E)  projector Linear-1 weight (PyTorch out,in, bias=False)
    gamma, beta: (D1,) BatchNorm1d weight / bias
    w2:     (D2, D1) projector Linear-2 weight (PyTorch out,in, bias=False)
    input_dtype: optionally jnp.bfloat16 to halve the dominant HBM image
        stream on bandwidth-bound v5e/v6e (accumulation stays f32).
    Returns (B, D2) f32.
    """
    B, C, H, W = x_nchw.shape
    HW = H * W
    E = conv_w.shape[0]
    D1, D2 = w1.shape[0], w2.shape[0]

    # (B, C, H, W) -> (B, C, H*W): pure reshape, NO host transpose. Spatial on
    # lanes, tiny channel axis on sublanes.
    x = x_nchw.reshape(B, C, HW)
    if input_dtype is not None:
        x = x.astype(input_dtype)

    ep = _round_up(max(E, 128), 128)    # lane-dense embedding width
    d2p = _round_up(max(D2, 128), 128)  # lane-dense final output store

    # Conv weight (E, C) -> (C, Ep); padded columns produce exactly-zero
    # activations -> zero pooled entries, so numerics are unchanged.
    wct = jnp.pad(jnp.transpose(conv_w), ((0, 0), (0, ep - E)))
    if input_dtype is not None:
        wct = wct.astype(input_dtype)
    # Linear-1 (D1, E) -> (Ep, D1); padded Ep rows multiply the zero embeddings.
    w1_p = jnp.pad(jnp.transpose(w1), ((0, ep - E), (0, 0)))
    # Linear-2 (D2, D1) -> (D1, D2p); zero-padded output columns sliced off later.
    w2_p = jnp.pad(jnp.transpose(w2), ((0, 0), (0, d2p - D2)))

    tb = _pick_tb(B, tb_max)
    thw = _pick_thw(HW, C, tb, jnp.dtype(x.dtype).itemsize)
    n_b, n_hw = B // tb, HW // thw

    # ---- Stage 1: backbone conv + ReLU + global average pool -> (B, Ep).
    # Grid: batch blocks on a leading "parallel" axis (megacore / v7x dual-TC
    # sharding), spatial tiles on a trailing "arbitrary" reduction axis with a
    # small pooled VMEM accumulator (init/finalize via pl.when). If DMA is
    # still exposed on v7x (3.2 TB/s HBM), bump the x BlockSpec with
    # pipeline_mode=pl.Buffered(3); raise vmem_limit_bytes on v6e to take
    # even larger tiles than the cross-chip-safe default budget.
    kernel1 = functools.partial(_backbone_pool_kernel, inv_hw=1.0 / HW)
    emb = pl.pallas_call(
        kernel1,
        out_shape=jax.ShapeDtypeStruct((B, ep), jnp.float32),
        grid=(n_b, n_hw),
        in_specs=[
            pl.BlockSpec((tb, C, thw), lambda i, k: (i, 0, k)),
            pl.BlockSpec((C, ep), lambda i, k: (0, 0)),
        ],
        out_specs=pl.BlockSpec((tb, ep), lambda i, k: (i, 0)),
        scratch_shapes=[pltpu.VMEM((tb, ep), jnp.float32)],
        compiler_params=pltpu.CompilerParams(
            dimension_semantics=("parallel", "arbitrary")),
    )(x, wct)

    # ---- Stage 2: Linear-1 (M=B matmul) -> BatchNorm1d (full-batch stats)
    # -> ReLU -> Linear-2, output padded to a lane-dense width.
    full = lambda shape: pl.BlockSpec(shape, lambda i: (0,) * len(shape))
    kernel2 = functools.partial(_projector_kernel, eps=1e-5)
    out_p = pl.pallas_call(
        kernel2,
        out_shape=jax.ShapeDtypeStruct((B, d2p), jnp.float32),
        grid=(1,),
        in_specs=[
            full((B, ep)),
            full((ep, D1)),
            full((1, D1)),
            full((1, D1)),
            full((D1, d2p)),
        ],
        out_specs=full((B, d2p)),
        compiler_params=pltpu.CompilerParams(
            dimension_semantics=("arbitrary",)),
    )(emb, w1_p, gamma.reshape(1, D1), beta.reshape(1, D1), w2_p)
    return out_p[:, :D2]


if __name__ == "__main__":
    # Small shapes consistent with the module.
    B, C, H, W = 2, 4, 16, 16          # input images (NCHW)
    E = 32                             # backbone.embedding_size
    projector_dims = [64, 32]          # sizes = [E, 64, 32]
    D1, D2 = projector_dims

    key = jax.random.PRNGKey(0)
    kx, kc, k1, k2 = jax.random.split(key, 4)

    x = jax.random.normal(kx, (B, C, H, W), dtype=jnp.float32)

    # Parameters in PyTorch layouts (out, in); the wrapper handles transposes.
    conv_w = jax.random.normal(kc, (E, C), dtype=jnp.float32) * 0.1      # 1x1 conv
    w1 = jax.random.normal(k1, (D1, E), dtype=jnp.float32) * 0.1         # Linear(E->D1)
    w2 = jax.random.normal(k2, (D2, D1), dtype=jnp.float32) * 0.1        # Linear(D1->D2)
    gamma = jnp.ones((D1,), dtype=jnp.float32)                           # BN weight init
    beta = jnp.zeros((D1,), dtype=jnp.float32)                           # BN bias init

    out = mmcr_encoder_forward(x, conv_w, w1, gamma, beta, w2)
    jax.block_until_ready(out)
    assert out.shape == (B, D2) and out.dtype == jnp.float32

    # Pure-JAX reference (same synthetic backbone + training-mode BN).
    xf = x.reshape(B, C, H * W)
    h = jnp.maximum(jnp.einsum("bcp,ec->bep", xf, conv_w), 0.0)
    emb_ref = jnp.mean(h, axis=2)
    zr = emb_ref @ w1.T
    mu = jnp.mean(zr, axis=0, keepdims=True)
    var = jnp.mean((zr - mu) ** 2, axis=0, keepdims=True)
    act = jnp.maximum((zr - mu) * jax.lax.rsqrt(var + 1e-5) * gamma + beta, 0.0)
    want = act @ w2.T
    assert jnp.allclose(out, want, rtol=1e-3, atol=1e-3), \
        float(jnp.max(jnp.abs(out - want)))

    print("KERNEL_OK")
</pallas_src>

<mosaic_0001>
module attributes {stable_mosaic.version = 11 : i64} {
  func.func @_backbone_pool_kernel(%arg0: i32, %arg1: i32, %arg2: memref<2x4x256xf32, #tpu.memory_space<vmem>>, %arg3: memref<4x128xf32, #tpu.memory_space<vmem>>, %arg4: memref<2x128xf32, #tpu.memory_space<vmem>>, %arg5: memref<2x128xf32, #tpu.memory_space<vmem>>) attributes {dimension_semantics = [#tpu.dimension_semantics<parallel>, #tpu.dimension_semantics<arbitrary>], iteration_bounds = array<i64: 1, 1>, scalar_prefetch = 0 : i64, scratch_operands = 1 : i64, tpu.core_type = #tpu.core_type<tc>, window_params = [{transform_indices = @transform_0, window_bounds = array<i64: 2, 4, 256>}, {pipeline_mode = #tpu.pipeline_mode<synchronous>, transform_indices = @transform_1, window_bounds = array<i64: 4, 128>}, {transform_indices = @transform_2, window_bounds = array<i64: 2, 128>}]} {
    %c0_i32 = arith.constant 0 : i32
    %0 = arith.cmpi eq, %arg1, %c0_i32 : i32
    %1 = arith.extui %0 : i1 to i32
    %c0_i32_0 = arith.constant 0 : i32
    %2 = arith.cmpi ne, %1, %c0_i32_0 : i32
    scf.if %2 {
      %cst_18 = arith.constant 0.000000e+00 : f32
      %25 = vector.broadcast %cst_18 : f32 to vector<2x128xf32>
      %c0_19 = arith.constant 0 : index
      %c0_20 = arith.constant 0 : index
      %26 = vector.load %arg5[%c0_19, %c0_20] : memref<2x128xf32, #tpu.memory_space<vmem>>, vector<2x128xf32>
      tpu.vector_store %arg5[%c0_19, %c0_20], %25 {strides = array<i32>} : memref<2x128xf32, #tpu.memory_space<vmem>>, vector<2x128xf32>,
    } else {
    }
    %c0 = arith.constant 0 : index
    %c0_1 = arith.constant 0 : index
    %3 = vector.load %arg3[%c0, %c0_1] : memref<4x128xf32, #tpu.memory_space<vmem>>, vector<4x128xf32>
    %c0_2 = arith.constant 0 : index
    %c0_3 = arith.constant 0 : index
    %c0_4 = arith.constant 0 : index
    %4 = vector.load %arg2[%c0_2, %c0_3, %c0_4] : memref<2x4x256xf32, #tpu.memory_space<vmem>>, vector<1x4x256xf32>
    %5 = vector.shape_cast %4 : vector<1x4x256xf32> to vector<4x256xf32>
    %cst = arith.constant dense<0.000000e+00> : vector<256x128xf32>
    %6 = tpu.matmul %5, %3, %cst {dimension_numbers = #tpu.dot_dimension_numbers<[0], [0], [1], [1], [0, 1, 1, 1], [], []>} : vector<4x256xf32>, vector<4x128xf32>, vector<256x128xf32> -> vector<256x128xf32>
    %cst_5 = arith.constant 0.000000e+00 : f32
    %7 = vector.broadcast %cst_5 : f32 to vector<256x128xf32>
    %8 = arith.maximumf %6, %7 : vector<256x128xf32>
    %cst_6 = arith.constant dense<0.000000e+00> : vector<128xf32>
    %9 = vector.multi_reduction <add>, %8, %cst_6 [0] : vector<256x128xf32> to vector<128xf32>
    %10 = vector.shape_cast %9 : vector<128xf32> to vector<1x128xf32>
    %c1 = arith.constant 1 : index
    %c0_7 = arith.constant 0 : index
    %c0_8 = arith.constant 0 : index
    %11 = vector.load %arg2[%c1, %c0_7, %c0_8] : memref<2x4x256xf32, #tpu.memory_space<vmem>>, vector<1x4x256xf32>
    %12 = vector.shape_cast %11 : vector<1x4x256xf32> to vector<4x256xf32>
    %cst_9 = arith.constant dense<0.000000e+00> : vector<256x128xf32>
    %13 = tpu.matmul %12, %3, %cst_9 {dimension_numbers = #tpu.dot_dimension_numbers<[0], [0], [1], [1], [0, 1, 1, 1], [], []>} : vector<4x256xf32>, vector<4x128xf32>, vector<256x128xf32> -> vector<256x128xf32>
    %cst_10 = arith.constant 0.000000e+00 : f32
    %14 = vector.broadcast %cst_10 : f32 to vector<256x128xf32>
    %15 = arith.maximumf %13, %14 : vector<256x128xf32>
    %cst_11 = arith.constant dense<0.000000e+00> : vector<128xf32>
    %16 = vector.multi_reduction <add>, %15, %cst_11 [0] : vector<256x128xf32> to vector<128xf32>
    %17 = vector.shape_cast %16 : vector<128xf32> to vector<1x128xf32>
    %c0_12 = arith.constant 0 : index
    %c0_13 = arith.constant 0 : index
    %18 = vector.load %arg5[%c0_12, %c0_13] : memref<2x128xf32, #tpu.memory_space<vmem>>, vector<2x128xf32>
    %19 = tpu.concatenate %10, %17 in 0 : vector<1x128xf32>, vector<1x128xf32> -> vector<2x128xf32>
    %20 = arith.addf %18, %19 : vector<2x128xf32>
    %c0_14 = arith.constant 0 : index
    %c0_15 = arith.constant 0 : index
    %21 = vector.load %arg5[%c0_14, %c0_15] : memref<2x128xf32, #tpu.memory_space<vmem>>, vector<2x128xf32>
    tpu.vector_store %arg5[%c0_14, %c0_15], %20 {strides = array<i32>} : memref<2x128xf32, #tpu.memory_space<vmem>>, vector<2x128xf32>,
    %c0_i32_16 = arith.constant 0 : i32
    %22 = arith.cmpi eq, %arg1, %c0_i32_16 : i32
    %23 = arith.extui %22 : i1 to i32
    %c0_i32_17 = arith.constant 0 : i32
    %24 = arith.cmpi ne, %23, %c0_i32_17 : i32
    scf.if %24 {
      %c0_18 = arith.constant 0 : index
      %c0_19 = arith.constant 0 : index
      %25 = vector.load %arg5[%c0_18, %c0_19] : memref<2x128xf32, #tpu.memory_space<vmem>>, vector<2x128xf32>
      %cst_20 = arith.constant 3.906250e-03 : f32
      %26 = vector.broadcast %cst_20 : f32 to vector<2x128xf32>
      %27 = arith.mulf %25, %26 : vector<2x128xf32>
      %c0_21 = arith.constant 0 : index
      %c0_22 = arith.constant 0 : index
      %28 = vector.load %arg4[%c0_21, %c0_22] : memref<2x128xf32, #tpu.memory_space<vmem>>, vector<2x128xf32>
      tpu.vector_store %arg4[%c0_21, %c0_22], %27 {strides = array<i32>} : memref<2x128xf32, #tpu.memory_space<vmem>>, vector<2x128xf32>,
    } else {
    }
    return
  }
  func.func @transform_0(%arg0: i32, %arg1: i32) -> (i32, i32, i32) {
    %c0_i32 = arith.constant 0 : i32
    %c0_i32_0 = arith.constant 0 : i32
    return %arg0, %c0_i32, %arg1 : i32, i32, i32
  }
  func.func @transform_1(%arg0: i32, %arg1: i32) -> (i32, i32) {
    %c0_i32 = arith.constant 0 : i32
    %c0_i32_0 = arith.constant 0 : i32
    %c0_i32_1 = arith.constant 0 : i32
    return %c0_i32, %c0_i32_0 : i32, i32
  }
  func.func @transform_2(%arg0: i32, %arg1: i32) -> (i32, i32) {
    %c0_i32 = arith.constant 0 : i32
    %c0_i32_0 = arith.constant 0 : i32
    return %arg0, %c0_i32 : i32, i32
  }
}

</mosaic_0001>

<bundles_post_ra>
// kernel: tpu_custom_call.1
= control target key start
LH: loop header
LB: loop body
LE: loop exit
PB: predicated region body
PF: predicated region fallthrough
CT: control target
= control target key end

     0   :  { %7 = vsyncpa [#allocation4], 0  ;;  %s1393_s0 = inlined_call_operand.hbm [shape: f32[2,4,256], index: 0, kind: input, shape index: {}]   ;;  %s1394_s1 = inlined_call_operand.hbm [shape: f32[4,128], index: 1, kind: input, shape index: {}]   ;;  %s1395_s2 = inlined_call_operand.hbm [shape: f32[2,128], index: 2, kind: output, shape index: {}]  }
   0x1   :  { %8 = vsyncpa [#allocation7], 0 }
   0x2   :  { %9 = vsyncpa [#allocation5], 0  ;;  %s1299_s9 = smov [#allocation3]  }
   0x3   :  { %s15_s10 = sshll.u32 %s1299_s9, 4  ;;  %s16_s10 = int_to_ptr.vmem [resolvable:$true] %s15_s10 }
   0x4   :  { %s1241_s11 = scalar_lea.vmem %s16_s10, 256  ;;  %p1246_p1 = scmp.lt.s32.totalorder %s16_s10, %s16_s10 }
   0x5   :  { %p1242_p0 = scmp.ne.s32.totalorder %s16_s10, %s1241_s11  ;;  %p1247_p2 = scmp.lt.s32.totalorder %s1241_s11, %s1241_s11 }
   0x7   :  { %p1248_p3 = por %p1247_p2, %p1246_p1 }
   0x9   :  { %p1249_p4 = pnand %p1248_p3, %p1242_p0 }
   0xb   :  { %1252 = shalt.err (!%p1249_p4)
}
   0xc   :  { %s1300_s12 = smov 128   ;;  %s1301_s13 = smov 8  }
   0xd   :  { %21 = dma.hbm_to_vmem [thread:$0]  %s1393_s0, 256, %s16_s10, [#allocation4], %s1300_s12, %s1300_s12, %s1301_s13  }
   0xe   :  { %s1302_s16 = smov [#allocation6]  }
   0xf   :  { %s28_s17 = sshll.u32 %s1302_s16, 4  ;;  %s29_s17 = int_to_ptr.vmem [resolvable:$true] %s28_s17 }
  0x10   :  { %s1261_s18 = scalar_lea.vmem %s29_s17, 64  ;;  %p1266_p6 = scmp.lt.s32.totalorder %s29_s17, %s29_s17 }
  0x11   :  { %p1262_p5 = scmp.ne.s32.totalorder %s29_s17, %s1261_s18  ;;  %p1267_p7 = scmp.lt.s32.totalorder %s1261_s18, %s1261_s18 }
  0x13   :  { %p1268_p8 = por %p1267_p7, %p1266_p6 }
  0x15   :  { %p1269_p9 = pnand %p1268_p8, %p1262_p5 }
  0x17   :  { %1272 = shalt.err (!%p1269_p9)
}
  0x18   :  { %31 = dma.hbm_to_vmem [thread:$0]  %s1394_s1, 64, %s29_s17, [#allocation7]  }
  0x19   :  { %1293 = dma.done.wait [#allocation4], 256  }
  0x1a   :  { %1294 = vsyncadd [#allocation4], 4294967040 }
  0x1b   :  { %1295 = dma.done.wait [#allocation7], 64  }
  0x1c   :  { %1296 = vsyncadd [#allocation7], 4294967232  ;;  %v1303_v0 = vmov 0.0   ;;  %vm209_vm0 = vcmask 1043456   ;;  %v44_v1 = vld [vmem:[#allocation3] sm:$0xff]  ;;  %v508_v4 = vld [vmem:[#allocation3 + $0x8] sm:$0xff] }
  0x1d   :  { %42 = vst [vmem:[#allocation2] sm:$0x3] %v1303_v0  ;;  %v43_v2 = vld [vmem:[#allocation6] sm:$0xf]  ;;  %48 = vxpose.xlu0.b32.start.end [1/1] (short) %v44_v1, 128  ;;  %v46_v3 = vcombine.high %v44_v1, %v44_v1  ;;  %v510_v5 = vcombine.high %v508_v4, %v508_v4  ;;  %vm112_vm1 = vcmask 31744   ;;  %vm967_vm2 = vcmask 1040384  }
  0x1e   :  { %1125 = vmatprep.subr.msk.mxu0 %vm209_vm0, %v43_v2  ;;  %1175 = vmatprep.subr.msk.mxu1 %vm209_vm0, %v43_v2  ;;  %s1304_s0 = smov [#allocation8]  }
  0x1f   :  { %1126 = vmatpush3.msk.msra.mxu0 %vm209_vm0, %v43_v2  ;;  %80 = vxpose.xlu1.b32.start.end [1/1] (short) %v46_v3, 128  ;;  %s983_s1 = sshll.u32 %s1304_s0, 4  ;;  %s984_s1 = int_to_ptr.vmem [resolvable:$true] %s983_s1 }
  0x20   :  { %1176 = vmatpush3.msk.msra.mxu1 %vm209_vm0, %v43_v2  ;;  %s1273_s21 = scalar_lea.vmem %s984_s1, 32  ;;  %p1278_p11 = scmp.lt.s32.totalorder %s984_s1, %s984_s1 }
  0x21   :  { %p1274_p10 = scmp.ne.s32.totalorder %s984_s1, %s1273_s21  ;;  %p1279_p12 = scmp.lt.s32.totalorder %s1273_s21, %s1273_s21 }
  0x23   :  { %p1280_p13 = por %p1279_p12, %p1278_p11 }
  0x25   :  { %p1281_p0 = pnand %p1280_p13, %p1274_p10 }
  0x5a   :  { %512 = vxpose.xlu0.b32.start.end [1/1] (short) %v508_v4, 128 }
  0x5c   :  { %544 = vxpose.xlu1.b32.start.end [1/1] (short) %v510_v5, 128 }
  0x99   :  { %v64_v6 = vpop.trf.xlu0 }
  0x9a   :  { %1127 = vmatprep.mubr.msk.f32.mxu0 %vm112_vm1, %v64_v6 }
  0x9b   :  { %v96_v7 = vpop.trf.xlu1 }
  0x9d   :  { %v65_v8 = vpop.trf.xlu0 }
  0x9e   :  { %1128 = vmatmul.mubr.msk.f32.vlgmr.msra.gmra.mxu0 %vm112_vm1, %v65_v8 }
  0x9f   :  { %v97_v9 = vpop.trf.xlu1 }
  0xa1   :  { %v66_v10 = vpop.trf.xlu0 }
  0xa2   :  { %1130 = vmatprep.mubr.msk.f32.mxu0 %vm112_vm1, %v66_v10 }
  0xa3   :  { %v98_v11 = vpop.trf.xlu1 }
  0xa5   :  { %v67_v12 = vpop.trf.xlu0 }
  0xa6   :  { %1131 = vmatmul.mubr.msk.f32.gmra.mxu0 %vm112_vm1, %v67_v12 }
  0xa7   :  { %v99_v13 = vpop.trf.xlu1 }
  0xa9   :  { %v68_v14 = vpop.trf.xlu0 }
  0xaa   :  { %1133 = vmatprep.mubr.msk.f32.mxu0 %vm112_vm1, %v68_v14 }
  0xab   :  { %v100_v15 = vpop.trf.xlu1 }
  0xad   :  { %v69_v16 = vpop.trf.xlu0 }
  0xae   :  { %1134 = vmatmul.mubr.msk.f32.gmra.mxu0 %vm112_vm1, %v69_v16 }
  0xaf   :  { %v101_v17 = vpop.trf.xlu1 }
  0xb1   :  { %v70_v18 = vpop.trf.xlu0 }
  0xb2   :  { %1136 = vmatprep.mubr.msk.f32.mxu0 %vm112_vm1, %v70_v18 }
  0xb3   :  { %v102_v19 = vpop.trf.xlu1 }
  0xb5   :  { %v71_v20 = vpop.trf.xlu0 }
  0xb6   :  { %1137 = vmatmul.mubr.msk.f32.gmra.mxu0 %vm112_vm1, %v71_v20 }
  0xb7   :  { %v103_v21 = vpop.trf.xlu1 }
  0xb9   :  { %v72_v22 = vpop.trf.xlu0 }
  0xba   :  { %1139 = vmatprep.mubr.msk.f32.mxu0 %vm112_vm1, %v72_v22 }
  0xbb   :  { %v104_v23 = vpop.trf.xlu1 }
  0xbd   :  { %v73_v24 = vpop.trf.xlu0 }
  0xbe   :  { %1140 = vmatmul.mubr.msk.f32.gmra.mxu0 %vm112_vm1, %v73_v24 }
  0xbf   :  { %v105_v25 = vpop.trf.xlu1 }
  0xc1   :  { %v74_v26 = vpop.trf.xlu0 }
  0xc2   :  { %1142 = vmatprep.mubr.msk.f32.mxu0 %vm112_vm1, %v74_v26 }
  0xc3   :  { %v106_v27 = vpop.trf.xlu1 }
  0xc5   :  { %v75_v28 = vpop.trf.xlu0 }
  0xc6   :  { %1143 = vmatmul.mubr.msk.f32.gmra.mxu0 %vm112_vm1, %v75_v28 }
  0xc7   :  { %v107_v29 = vpop.trf.xlu1 }
  0xc9   :  { %v76_v30 = vpop.trf.xlu0 }
  0xca   :  { %1145 = vmatprep.mubr.msk.f32.mxu0 %vm112_vm1, %v76_v30 }
  0xcb   :  { %v108_v31 = vpop.trf.xlu1 }
  0xcd   :  { %v77_v32 = vpop.trf.xlu0 }
  0xce   :  { %1146 = vmatmul.mubr.msk.f32.gmra.mxu0 %vm112_vm1, %v77_v32 }
  0xcf   :  { %v109_v33 = vpop.trf.xlu1 }
  0xd1   :  { %v78_v34 = vpop.trf.xlu0 }
  0xd2   :  { %1148 = vmatprep.mubr.msk.f32.mxu0 %vm112_vm1, %v78_v34 }
  0xd3   :  { %v110_v35 = vpop.trf.xlu1 }
  0xd5   :  { %v79_v36 = vpop.trf.xlu0 }
  0xd6   :  { %1149 = vmatmul.mubr.msk.f32.gmra.mxu0 %vm112_vm1, %v79_v36 }
  0xd7   :  { %1151 = vmatprep.mubr.msk.f32.mxu0 %vm112_vm1, %v96_v7  ;;  %v111_v37 = vpop.trf.xlu1 }
  0xd9   :  { %v528_v38 = vpop.trf.xlu0 }
  0xda   :  { %1152 = vmatmul.mubr.msk.f32.gmra.mxu0 %vm112_vm1, %v97_v9  ;;  %1177 = vmatprep.mubr.msk.f32.mxu1 %vm112_vm1, %v528_v38 }
  0xdb   :  { %1154 = vmatprep.mubr.msk.f32.mxu0 %vm112_vm1, %v98_v11  ;;  %v560_v39 = vpop.trf.xlu1 }
  0xdd   :  { %v529_v40 = vpop.trf.xlu0 }
  0xde   :  { %1155 = vmatmul.mubr.msk.f32.gmra.mxu0 %vm112_vm1, %v99_v13  ;;  %1178 = vmatmul.mubr.msk.f32.vlgmr.msra.gmra.mxu1 %vm112_vm1, %v529_v40 }
  0xdf   :  { %1157 = vmatprep.mubr.msk.f32.mxu0 %vm112_vm1, %v100_v15  ;;  %v561_v41 = vpop.trf.xlu1 }
  0xe1   :  { %v530_v42 = vpop.trf.xlu0 }
  0xe2   :  { %1158 = vmatmul.mubr.msk.f32.gmra.mxu0 %vm112_vm1, %v101_v17  ;;  %1180 = vmatprep.mubr.msk.f32.mxu1 %vm112_vm1, %v530_v42 }
  0xe3   :  { %1160 = vmatprep.mubr.msk.f32.mxu0 %vm112_vm1, %v102_v19  ;;  %v562_v44 = vpop.trf.xlu1 }
  0xe5   :  { %v531_v43 = vpop.trf.xlu0 }
  0xe6   :  { %1161 = vmatmul.mubr.msk.f32.gmra.mxu0 %vm112_vm1, %v103_v21  ;;  %1181 = vmatmul.mubr.msk.f32.gmra.mxu1 %vm112_vm1, %v531_v43 }
  0xe7   :  { %1163 = vmatprep.mubr.msk.f32.mxu0 %vm112_vm1, %v104_v23  ;;  %v563_v46 = vpop.trf.xlu1 }
  0xe9   :  { %v532_v45 = vpop.trf.xlu0 }
  0xea   :  { %1164 = vmatmul.mubr.msk.f32.gmra.mxu0 %vm112_vm1, %v105_v25  ;;  %1183 = vmatprep.mubr.msk.f32.mxu1 %vm112_vm1, %v532_v45 }
  0xeb   :  { %1166 = vmatprep.mubr.msk.f32.mxu0 %vm112_vm1, %v106_v27  ;;  %v564_v49 = vpop.trf.xlu1 }
  0xed   :  { %v533_v47 = vpop.trf.xlu0 }
  0xee   :  { %1167 = vmatmul.mubr.msk.f32.gmra.mxu0 %vm112_vm1, %v107_v29  ;;  %1184 = vmatmul.mubr.msk.f32.gmra.mxu1 %vm112_vm1, %v533_v47 }
  0xef   :  { %1169 = vmatprep.mubr.msk.f32.mxu0 %vm112_vm1, %v108_v31  ;;  %v565_v51 = vpop.trf.xlu1 }
  0xf1   :  { %v534_v48 = vpop.trf.xlu0 }
  0xf2   :  { %1170 = vmatmul.mubr.msk.f32.gmra.mxu0 %vm112_vm1, %v109_v33  ;;  %1186 = vmatprep.mubr.msk.f32.mxu1 %vm112_vm1, %v534_v48 }
  0xf3   :  { %1172 = vmatprep.mubr.msk.f32.mxu0 %vm112_vm1, %v110_v35  ;;  %v566_v54 = vpop.trf.xlu1 }
  0xf5   :  { %v535_v50 = vpop.trf.xlu0 }
  0xf6   :  { %1173 = vmatmul.mubr.msk.f32.gmra.mxu0 %vm112_vm1, %v111_v37  ;;  %1187 = vmatmul.mubr.msk.f32.gmra.mxu1 %vm112_vm1, %v535_v50 }
  0xf7   :  { %v567_v56 = vpop.trf.xlu1 }
  0xf9   :  { %v536_v52 = vpop.trf.xlu0 }
  0xfa   :  { %1189 = vmatprep.mubr.msk.f32.mxu1 %vm112_vm1, %v536_v52 }
  0xfb   :  { %v568_v59 = vpop.trf.xlu1 }
  0xfd   :  { %v537_v53 = vpop.trf.xlu0 }
  0xfe   :  { %1190 = vmatmul.mubr.msk.f32.gmra.mxu1 %vm112_vm1, %v537_v53 }
  0xff   :  { %v569_v61 = vpop.trf.xlu1 }
 0x101   :  { %v538_v55 = vpop.trf.xlu0 }
 0x102   :  { %1192 = vmatprep.mubr.msk.f32.mxu1 %vm112_vm1, %v538_v55 }
 0x103   :  { %v570_v0 = vpop.trf.xlu1 }
 0x105   :  { %v539_v57 = vpop.trf.xlu0 }
 0x106   :  { %1193 = vmatmul.mubr.msk.f32.gmra.mxu1 %vm112_vm1, %v539_v57 }
 0x107   :  { %v571_v1 = vpop.trf.xlu1 }
 0x109   :  { %v540_v58 = vpop.trf.xlu0 }
 0x10a   :  { %1195 = vmatprep.mubr.msk.f32.mxu1 %vm112_vm1, %v540_v58 }
 0x10b   :  { %v572_v2 = vpop.trf.xlu1 }
 0x10d   :  { %v541_v60 = vpop.trf.xlu0 }
 0x10e   :  { %1196 = vmatmul.mubr.msk.f32.gmra.mxu1 %vm112_vm1, %v541_v60 }
 0x10f   :  { %v573_v3 = vpop.trf.xlu1 }
 0x111   :  { %v542_v62 = vpop.trf.xlu0 }
 0x112   :  { %1198 = vmatprep.mubr.msk.f32.mxu1 %vm112_vm1, %v542_v62 }
 0x113   :  { %v574_v4 = vpop.trf.xlu1 }
 0x115   :  { %v543_v63 = vpop.trf.xlu0 }
 0x116   :  { %1199 = vmatmul.mubr.msk.f32.gmra.mxu1 %vm112_vm1, %v543_v63 }
 0x117   :  { %1201 = vmatprep.mubr.msk.f32.mxu1 %vm112_vm1, %v560_v39  ;;  %v575_v5 = vpop.trf.xlu1 }
 0x11a   :  { %1202 = vmatmul.mubr.msk.f32.gmra.mxu1 %vm112_vm1, %v561_v41 }
 0x11b   :  { %1204 = vmatprep.mubr.msk.f32.mxu1 %vm112_vm1, %v562_v44 }
 0x11e   :  { %1205 = vmatmul.mubr.msk.f32.gmra.mxu1 %vm112_vm1, %v563_v46 }
 0x11f   :  { %1207 = vmatprep.mubr.msk.f32.mxu1 %vm112_vm1, %v564_v49 }
 0x122   :  { %1208 = vmatmul.mubr.msk.f32.gmra.mxu1 %vm112_vm1, %v565_v51 }
 0x123   :  { %1210 = vmatprep.mubr.msk.f32.mxu1 %vm112_vm1, %v566_v54 }
 0x126   :  { %1211 = vmatmul.mubr.msk.f32.gmra.mxu1 %vm112_vm1, %v567_v56 }
 0x127   :  { %1213 = vmatprep.mubr.msk.f32.mxu1 %vm112_vm1, %v568_v59 }
 0x12a   :  { %1214 = vmatmul.mubr.msk.f32.gmra.mxu1 %vm112_vm1, %v569_v61 }
 0x12b   :  { %1216 = vmatprep.mubr.msk.f32.mxu1 %vm112_vm1, %v570_v0 }
 0x12e   :  { %1217 = vmatmul.mubr.msk.f32.gmra.mxu1 %vm112_vm1, %v571_v1 }
 0x12f   :  { %1219 = vmatprep.mubr.msk.f32.mxu1 %vm112_vm1, %v572_v2 }
 0x132   :  { %1220 = vmatmul.mubr.msk.f32.gmra.mxu1 %vm112_vm1, %v573_v3 }
 0x133   :  { %1222 = vmatprep.mubr.msk.f32.mxu1 %vm112_vm1, %v574_v4 }
 0x136   :  { %1223 = vmatmul.mubr.msk.f32.gmra.mxu1 %vm112_vm1, %v575_v5 }
 0x15e   :  { %v1129_v6 = vpop.f32.mrf.mxu0 }
 0x15f   :  { %v439_v12 = vmax.f32 %v1129_v6, 0.0 }
 0x160   :  { %v279_v7 = vpop.f32.mrf.mxu0 }
 0x161   :  { %v438_v10 = vmax.f32 %v279_v7, 0.0 }
 0x163   :  { %v470_v14 = vadd.f32 %v439_v12, %v438_v10 }
 0x166   :  { %v1132_v8 = vpop.f32.mrf.mxu0 }
 0x167   :  { %v441_v18 = vmax.f32 %v1132_v8, 0.0 }
 0x168   :  { %v289_v9 = vpop.f32.mrf.mxu0 }
 0x169   :  { %v440_v13 = vmax.f32 %v289_v9, 0.0 }
 0x16b   :  { %v471_v16 = vadd.f32 %v470_v14, %v440_v13 }
 0x16d   :  { %v472_v20 = vadd.f32 %v471_v16, %v441_v18 }
 0x16e   :  { %v1135_v11 = vpop.f32.mrf.mxu0 }
 0x16f   :  { %v443_v24 = vmax.f32 %v1135_v11, 0.0 }
 0x170   :  { %v299_v15 = vpop.f32.mrf.mxu0 }
 0x171   :  { %v442_v19 = vmax.f32 %v299_v15, 0.0 }
 0x173   :  { %v473_v22 = vadd.f32 %v472_v20, %v442_v19 }
 0x175   :  { %v474_v26 = vadd.f32 %v473_v22, %v443_v24 }
 0x176   :  { %v1138_v17 = vpop.f32.mrf.mxu0 }
 0x177   :  { %v445_v30 = vmax.f32 %v1138_v17, 0.0 }
 0x178   :  { %v309_v21 = vpop.f32.mrf.mxu0 }
 0x179   :  { %v444_v25 = vmax.f32 %v309_v21, 0.0 }
 0x17b   :  { %v475_v28 = vadd.f32 %v474_v26, %v444_v25 }
 0x17d   :  { %v476_v32 = vadd.f32 %v475_v28, %v445_v30 }
 0x17e   :  { %v1141_v23 = vpop.f32.mrf.mxu0 }
 0x17f   :  { %v447_v36 = vmax.f32 %v1141_v23, 0.0 }
 0x180   :  { %v319_v27 = vpop.f32.mrf.mxu0 }
 0x181   :  { %v446_v31 = vmax.f32 %v319_v27, 0.0 }
 0x183   :  { %v477_v34 = vadd.f32 %v476_v32, %v446_v31 }
 0x185   :  { %v478_v38 = vadd.f32 %v477_v34, %v447_v36 }
 0x186   :  { %v1144_v29 = vpop.f32.mrf.mxu0 }
 0x187   :  { %v449_v42 = vmax.f32 %v1144_v29, 0.0 }
 0x188   :  { %v329_v33 = vpop.f32.mrf.mxu0 }
 0x189   :  { %v448_v37 = vmax.f32 %v329_v33, 0.0 }
 0x18b   :  { %v479_v40 = vadd.f32 %v478_v38, %v448_v37 }
 0x18d   :  { %v480_v44 = vadd.f32 %v479_v40, %v449_v42 }
 0x18e   :  { %v1147_v35 = vpop.f32.mrf.mxu0 }
 0x18f   :  { %v451_v48 = vmax.f32 %v1147_v35, 0.0 }
 0x190   :  { %v339_v39 = vpop.f32.mrf.mxu0 }
 0x191   :  { %v450_v43 = vmax.f32 %v339_v39, 0.0 }
 0x193   :  { %v481_v47 = vadd.f32 %v480_v44, %v450_v43 }
 0x195   :  { %v482_v52 = vadd.f32 %v481_v47, %v451_v48 }
 0x196   :  { %v1150_v41 = vpop.f32.mrf.mxu0 }
 0x197   :  { %v453_v56 = vmax.f32 %v1150_v41, 0.0 }
 0x198   :  { %v349_v45 = vpop.f32.mrf.mxu0 }
 0x199   :  { %v452_v49 = vmax.f32 %v349_v45, 0.0 }
 0x19a   :  { %v1153_v50 = vpop.f32.mrf.mxu0 }
 0x19b   :  { %v483_v54 = vadd.f32 %v482_v52, %v452_v49  ;;  %v455_v5 = vmax.f32 %v1153_v50, 0.0 }
 0x19c   :  { %v359_v55 = vpop.f32.mrf.mxu0 }
 0x19d   :  { %v454_v58 = vmax.f32 %v359_v55, 0.0  ;;  %v484_v59 = vadd.f32 %v483_v54, %v453_v56 }
 0x19e   :  { %v1179_v46 = vpop.f32.mrf.mxu1  ;;  %v1156_v61 = vpop.f32.mrf.mxu0 }
 0x19f   :  { %v898_v63 = vmax.f32 %v1179_v46, 0.0  ;;  %v485_v1 = vadd.f32 %v484_v59, %v454_v58  ;;  %v457_v19 = vmax.f32 %v1156_v61, 0.0 }
 0x1a0   :  { %v738_v51 = vpop.f32.mrf.mxu1  ;;  %v369_v3 = vpop.f32.mrf.mxu0 }
 0x1a1   :  { %v897_v60 = vmax.f32 %v738_v51, 0.0  ;;  %v456_v8 = vmax.f32 %v369_v3, 0.0  ;;  %v486_v9 = vadd.f32 %v485_v1, %v455_v5 }
 0x1a2   :  { %v1159_v12 = vpop.f32.mrf.mxu0 }
 0x1a3   :  { %v929_v2 = vadd.f32 %v898_v63, %v897_v60  ;;  %v487_v15 = vadd.f32 %v486_v9, %v456_v8  ;;  %v459_v33 = vmax.f32 %v1159_v12, 0.0 }
 0x1a4   :  { %v379_v17 = vpop.f32.mrf.mxu0 }
 0x1a5   :  { %v458_v22 = vmax.f32 %v379_v17, 0.0  ;;  %v488_v23 = vadd.f32 %v487_v15, %v457_v19 }
 0x1a6   :  { %v1182_v53 = vpop.f32.mrf.mxu1  ;;  %v1162_v25 = vpop.f32.mrf.mxu0 }
 0x1a7   :  { %v900_v10 = vmax.f32 %v1182_v53, 0.0  ;;  %v489_v28 = vadd.f32 %v488_v23, %v458_v22  ;;  %v461_v46 = vmax.f32 %v1162_v25, 0.0 }
 0x1a8   :  { %v748_v57 = vpop.f32.mrf.mxu1  ;;  %v389_v31 = vpop.f32.mrf.mxu0 }
 0x1a9   :  { %v899_v0 = vmax.f32 %v748_v57, 0.0  ;;  %v460_v36 = vmax.f32 %v389_v31, 0.0  ;;  %v490_v37 = vadd.f32 %v489_v28, %v459_v33 }
 0x1aa   :  { %v1165_v39 = vpop.f32.mrf.mxu0 }
 0x1ab   :  { %v930_v6 = vadd.f32 %v929_v2, %v899_v0  ;;  %v491_v42 = vadd.f32 %v490_v37, %v460_v36  ;;  %v463_v59 = vmax.f32 %v1165_v39, 0.0 }
 0x1ac   :  { %v399_v44 = vpop.f32.mrf.mxu0 }
 0x1ad   :  { %v931_v13 = vadd.f32 %v930_v6, %v900_v10  ;;  %v462_v49 = vmax.f32 %v399_v44, 0.0  ;;  %v492_v50 = vadd.f32 %v491_v42, %v461_v46 }
 0x1ae   :  { %v1185_v62 = vpop.f32.mrf.mxu1  ;;  %v1168_v53 = vpop.f32.mrf.mxu0 }
 0x1af   :  { %v902_v20 = vmax.f32 %v1185_v62, 0.0  ;;  %v493_v55 = vadd.f32 %v492_v50, %v462_v49  ;;  %v465_v12 = vmax.f32 %v1168_v53, 0.0 }
 0x1b0   :  { %v758_v4 = vpop.f32.mrf.mxu1  ;;  %v409_v57 = vpop.f32.mrf.mxu0 }
 0x1b1   :  { %v901_v11 = vmax.f32 %v758_v4, 0.0  ;;  %v464_v62 = vmax.f32 %v409_v57, 0.0  ;;  %v494_v63 = vadd.f32 %v493_v55, %v463_v59 }
 0x1b2   :  { %v1171_v2 = vpop.f32.mrf.mxu0 }
 0x1b3   :  { %v932_v16 = vadd.f32 %v931_v13, %v901_v11 }
 0x1b4   :  { %v419_v10 = vpop.f32.mrf.mxu0 }
 0x1b5   :  { %v933_v24 = vadd.f32 %v932_v16, %v902_v20  ;;  %v466_v16 = vmax.f32 %v419_v10, 0.0 }
 0x1b6   :  { %v1188_v7 = vpop.f32.mrf.mxu1  ;;  %v1174_v20 = vpop.f32.mrf.mxu0 }
 0x1b7   :  { %v904_v29 = vmax.f32 %v1188_v7, 0.0  ;;  %v495_v7 = vadd.f32 %v494_v63, %v464_v62  ;;  %v469_v46 = vmax.f32 %v1174_v20, 0.0 }
 0x1b8   :  { %v768_v14 = vpop.f32.mrf.mxu1  ;;  %v429_v28 = vpop.f32.mrf.mxu0 }
 0x1b9   :  { %v903_v21 = vmax.f32 %v768_v14, 0.0  ;;  %v496_v17 = vadd.f32 %v495_v7, %v465_v12 }
 0x1bb   :  { %v934_v27 = vadd.f32 %v933_v24, %v903_v21  ;;  %v497_v25 = vadd.f32 %v496_v17, %v466_v16  ;;  %v966_v16 = vld [vmem:[#allocation2] sm:$0x3] }
 0x1bd   :  { %v935_v34 = vadd.f32 %v934_v27, %v904_v29 }
 0x1be   :  { %v1191_v18 = vpop.f32.mrf.mxu1 }
 0x1bf   :  { %v906_v40 = vmax.f32 %v1191_v18, 0.0 }
 0x1c0   :  { %v778_v26 = vpop.f32.mrf.mxu1 }
 0x1c1   :  { %v905_v30 = vmax.f32 %v778_v26, 0.0 }
 0x1c3   :  { %v936_v38 = vadd.f32 %v935_v34, %v905_v30  ;;  %v467_v30 = vmax.f32 %v1171_v2, 0.0  ;;  %v468_v34 = vmax.f32 %v429_v28, 0.0 }
 0x1c5   :  { %v937_v43 = vadd.f32 %v936_v38, %v906_v40 }
 0x1c6   :  { %v1194_v32 = vpop.f32.mrf.mxu1 }
 0x1c7   :  { %v908_v51 = vmax.f32 %v1194_v32, 0.0 }
 0x1c8   :  { %v788_v35 = vpop.f32.mrf.mxu1 }
 0x1c9   :  { %v907_v41 = vmax.f32 %v788_v35, 0.0  ;;  %v498_v35 = vadd.f32 %v497_v25, %v467_v30 }
 0x1cb   :  { %v938_v47 = vadd.f32 %v937_v43, %v907_v41  ;;  %v499_v42 = vadd.f32 %v498_v35, %v468_v34 }
 0x1cd   :  { %v939_v54 = vadd.f32 %v938_v47, %v908_v51  ;;  %v500_v50 = vadd.f32 %v499_v42, %v469_v46 }
 0x1ce   :  { %v1197_v45 = vpop.f32.mrf.mxu1 }
 0x1cf   :  { %v910_v60 = vmax.f32 %v1197_v45, 0.0  ;;  %v501_v57 = vrot.slane %v500_v50, 4 }
 0x1d0   :  { %v798_v48 = vpop.f32.mrf.mxu1 }
 0x1d1   :  { %v909_v52 = vmax.f32 %v798_v48, 0.0 }
 0x1d3   :  { %v940_v56 = vadd.f32 %v939_v54, %v909_v52 }
 0x1d5   :  { %v941_v1 = vadd.f32 %v940_v56, %v910_v60 }
 0x1d6   :  { %v1200_v58 = vpop.f32.mrf.mxu1 }
 0x1d7   :  { %v912_v4 = vmax.f32 %v1200_v58, 0.0 }
 0x1d8   :  { %v808_v61 = vpop.f32.mrf.mxu1 }
 0x1d9   :  { %v911_v0 = vmax.f32 %v808_v61, 0.0 }
 0x1da   :  { %v1203_v3 = vpop.f32.mrf.mxu1 }
 0x1db   :  { %v942_v5 = vadd.f32 %v941_v1, %v911_v0  ;;  %v914_v13 = vmax.f32 %v1203_v3, 0.0  ;;  %v502_v0 = vadd.f32 %v501_v57, %v500_v50 }
 0x1dc   :  { %v818_v6 = vpop.f32.mrf.mxu1 }
 0x1dd   :  { %v913_v8 = vmax.f32 %v818_v6, 0.0  ;;  %v943_v9 = vadd.f32 %v942_v5, %v912_v4  ;;  %v503_v5 = vrot.slane %v502_v0, 2 }
 0x1de   :  { %v1206_v11 = vpop.f32.mrf.mxu1 }
 0x1df   :  { %v944_v14 = vadd.f32 %v943_v9, %v913_v8  ;;  %v916_v22 = vmax.f32 %v1206_v11, 0.0  ;;  %v504_v8 = vadd.f32 %v503_v5, %v502_v0 }
 0x1e0   :  { %v828_v15 = vpop.f32.mrf.mxu1 }
 0x1e1   :  { %v915_v18 = vmax.f32 %v828_v15, 0.0  ;;  %v945_v19 = vadd.f32 %v944_v14, %v914_v13  ;;  %v505_v11 = vrot.slane %v504_v8, 1 }
 0x1e2   :  { %v1209_v21 = vpop.f32.mrf.mxu1 }
 0x1e3   :  { %v946_v23 = vadd.f32 %v945_v19, %v915_v18  ;;  %v918_v31 = vmax.f32 %v1209_v21, 0.0  ;;  %v506_v14 = vadd.f32 %v505_v11, %v504_v8 }
 0x1e4   :  { %v838_v24 = vpop.f32.mrf.mxu1 }
 0x1e5   :  { %v917_v26 = vmax.f32 %v838_v24, 0.0  ;;  %v947_v27 = vadd.f32 %v946_v23, %v916_v22 }
 0x1e6   :  { %v1212_v29 = vpop.f32.mrf.mxu1 }
 0x1e7   :  { %v948_v32 = vadd.f32 %v947_v27, %v917_v26  ;;  %v920_v39 = vmax.f32 %v1212_v29, 0.0 }
 0x1e8   :  { %v848_v33 = vpop.f32.mrf.mxu1 }
 0x1e9   :  { %v919_v36 = vmax.f32 %v848_v33, 0.0  ;;  %v949_v37 = vadd.f32 %v948_v32, %v918_v31 }
 0x1ea   :  { %v1215_v38 = vpop.f32.mrf.mxu1 }
 0x1eb   :  { %v950_v40 = vadd.f32 %v949_v37, %v919_v36  ;;  %v922_v47 = vmax.f32 %v1215_v38, 0.0 }
 0x1ec   :  { %v858_v41 = vpop.f32.mrf.mxu1 }
 0x1ed   :  { %v921_v43 = vmax.f32 %v858_v41, 0.0  ;;  %v951_v44 = vadd.f32 %v950_v40, %v920_v39 }
 0x1ee   :  { %v1218_v45 = vpop.f32.mrf.mxu1 }
 0x1ef   :  { %v952_v48 = vadd.f32 %v951_v44, %v921_v43  ;;  %v924_v54 = vmax.f32 %v1218_v45, 0.0 }
 0x1f0   :  { %v868_v49 = vpop.f32.mrf.mxu1 }
 0x1f1   :  { %v923_v51 = vmax.f32 %v868_v49, 0.0  ;;  %v953_v52 = vadd.f32 %v952_v48, %v922_v47 }
 0x1f2   :  { %v1221_v53 = vpop.f32.mrf.mxu1 }
 0x1f3   :  { %v954_v55 = vadd.f32 %v953_v52, %v923_v51  ;;  %v926_v61 = vmax.f32 %v1221_v53, 0.0 }
 0x1f4   :  { %v878_v56 = vpop.f32.mrf.mxu1 }
 0x1f5   :  { %v925_v58 = vmax.f32 %v878_v56, 0.0  ;;  %v955_v59 = vadd.f32 %v954_v55, %v924_v54 }
 0x1f6   :  { %v1224_v60 = vpop.f32.mrf.mxu1 }
 0x1f7   :  { %v956_v62 = vadd.f32 %v955_v59, %v925_v58  ;;  %v928_v3 = vmax.f32 %v1224_v60, 0.0 }
 0x1f8   :  { %v888_v63 = vpop.f32.mrf.mxu1 }
 0x1f9   :  { %v927_v1 = vmax.f32 %v888_v63, 0.0  ;;  %v957_v2 = vadd.f32 %v956_v62, %v926_v61 }
 0x1fb   :  { %v958_v4 = vadd.f32 %v957_v2, %v927_v1 }
 0x1fd   :  { %v959_v6 = vadd.f32 %v958_v4, %v928_v3 }
 0x1ff   :  { %v960_v7 = vrot.slane %v959_v6, 4 }
 0x201   :  { %v961_v9 = vadd.f32 %v960_v7, %v959_v6 }
 0x203   :  { %v962_v10 = vrot.slane %v961_v9, 2 }
 0x205   :  { %v963_v12 = vadd.f32 %v962_v10, %v961_v9 }
 0x207   :  { %v964_v13 = vrot.slane %v963_v12, 1 }
 0x209   :  { %v965_v15 = vadd.f32 %v964_v13, %v963_v12 }
 0x20b   :  { %v968_v17 = vsel %vm967_vm2, %v506_v14, %v965_v15 }
 0x20c   :  { %v969_v18 = vadd.f32 %v968_v17, %v966_v16 }
 0x20e   :  { %970 = vst [vmem:[#allocation2] sm:$0x3] %v969_v18 }
 0x215   :  { %v974_v19 = vld [vmem:[#allocation2] sm:$0x3] }
 0x216   :  { %v975_v20 = vmul.f32 0.00390625, %v974_v19 }
 0x218   :  { %976 = vst [vmem:[#allocation8] sm:$0x3] %v975_v20 }
 0x219   :  { %1284 = shalt.err (!%p1281_p0)
}
 0x21a   :  { %986 = dma.vmem_to_hbm [thread:$0]  %s984_s1, 32, %s1395_s2, [#allocation5]  }
 0x21b   :  { %1297 = dma.done.wait [#allocation5], 32  }
 0x21c   :  { %1298 = vsyncadd [#allocation5], 4294967264 }
 0x21d   :  { %990 = vsyncpa [#allocation4], 1 }
 0x21e   :  { %991 = vsyncpa [#allocation7], 1 }
 0x21f   :  { %992 = vsyncpa [#allocation5], 1 }

</bundles_post_ra>
